<compile_context>
chip_gen: v7x
topology: tpu7x:2x2x1
jax: 0.10.0
libtpu: 0.0.40
codegen_flags: <defaults>
</compile_context>

<pallas_src>
import functools

import jax
import jax.numpy as jnp
from jax import lax
from jax.experimental import pallas as pl
from jax.experimental.pallas import tpu as pltpu

_LANES = 128
_MAX_BLOCK_ROWS = 4096           # 4096 x 128 f32 = 2 MiB per input block
_VMEM_LIMIT = 32 * 1024 * 1024   # safe on all generations (raises v5e's 16 MiB default)


def _round_down(x, m):
    return (x // m) * m


def _make_sse_kernel(num_pairs, block_rows, valid_rows):
    """Accumulate per-pair sum((a - b)^2) into a tiny resident (1, 128) accumulator."""
    needs_mask = (valid_rows % block_rows) != 0

    def kernel(*refs):
        in_refs = refs[: 2 * num_pairs]
        o_ref = refs[2 * num_pairs]
        step = pl.program_id(0)

        @pl.when(step == 0)
        def _init():
            o_ref[...] = jnp.zeros_like(o_ref)

        if needs_mask:
            row_ids = step * block_rows + lax.broadcasted_iota(
                jnp.int32, (block_rows, _LANES), 0)
            mask = row_ids < valid_rows

        for p in range(num_pairs):
            a = in_refs[2 * p][...].astype(jnp.float32)
            b = in_refs[2 * p + 1][...].astype(jnp.float32)
            d = a - b
            dd = d * d
            if needs_mask:
                dd = jnp.where(mask, dd, 0.0)
            # In-kernel sublane reduction -> (1, 128) partial per pair; the
            # reduction is hidden under the HBM-bandwidth bottleneck.
            o_ref[p] = o_ref[p] + jnp.sum(dd, axis=0, keepdims=True)

    return kernel


def _pairs_sse_2d(pairs_2d, rows):
    """SSE over (rows, 128) slabs for each pair, fused into one pallas_call."""
    num_pairs = len(pairs_2d)
    block_rows = min(_MAX_BLOCK_ROWS, _round_down(rows, 8))
    num_blocks = pl.cdiv(rows, block_rows)

    kernel = _make_sse_kernel(num_pairs, block_rows, rows)

    flat_inputs = []
    for a, b in pairs_2d:
        flat_inputs.append(a)
        flat_inputs.append(b)

    in_spec = pl.BlockSpec((block_rows, _LANES), lambda i: (i, 0))

    partials = pl.pallas_call(
        kernel,
        out_shape=jax.ShapeDtypeStruct((num_pairs, 1, _LANES), jnp.float32),
        grid_spec=pltpu.PrefetchScalarGridSpec(
            num_scalar_prefetch=0,
            grid=(num_blocks,),
            in_specs=[in_spec] * (2 * num_pairs),
            out_specs=pl.BlockSpec((num_pairs, 1, _LANES),
                                   lambda i: (0, 0, 0)),
        ),
        compiler_params=pltpu.CompilerParams(
            dimension_semantics=("arbitrary",),
            vmem_limit_bytes=_VMEM_LIMIT,
        ),
    )(*flat_inputs)

    # Final tiny (128-lane) cross-lane reduction in plain JAX.
    return jnp.sum(partials, axis=(1, 2))   # (num_pairs,)


def _group_sse(pairs):
    """Per-pair sum((a - b)^2).  All pairs must have the same element count."""
    n = pairs[0][0].size
    n_main = _round_down(n, _LANES)
    rows = n_main // _LANES

    if rows < 8:
        # Tiny inputs: a kernel launch is pure overhead; plain JAX is fine.
        return jnp.stack([
            jnp.sum((a.reshape(-1).astype(jnp.float32)
                     - b.reshape(-1).astype(jnp.float32)) ** 2)
            for a, b in pairs])

    mains = []
    tails = []
    for a, b in pairs:
        af = a.reshape(-1)
        bf = b.reshape(-1)
        if n_main == n:
            mains.append((af.reshape(rows, _LANES), bf.reshape(rows, _LANES)))
            tails.append(jnp.float32(0.0))
        else:
            # Rare ragged tail (< 128 elems): kernel streams the bulk, JAX the rest.
            mains.append((af[:n_main].reshape(rows, _LANES),
                          bf[:n_main].reshape(rows, _LANES)))
            ta = af[n_main:].astype(jnp.float32)
            tb = bf[n_main:].astype(jnp.float32)
            tails.append(jnp.sum((ta - tb) ** 2))

    return _pairs_sse_2d(mains, rows) + jnp.stack(tails)


def dual_domain_loss(img, img_gt, k, k_gt, *, lambda_l: float = 0.0):
    """lambda_l * mean((img - img_gt)^2) + mean((k - k_gt)^2)."""
    assert img.shape == img_gt.shape and k.shape == k_gt.shape
    if img.size == k.size:
        # Fused: both MSE terms stream through a single pallas_call.
        sse = _group_sse([(img, img_gt), (k, k_gt)])
        sse_img, sse_k = sse[0], sse[1]
    else:
        sse_img = _group_sse([(img, img_gt)])[0]
        sse_k = _group_sse([(k, k_gt)])[0]

    mse_img = sse_img / jnp.float32(img.size)
    mse_k = sse_k / jnp.float32(k.size)
    return jnp.float32(lambda_l) * mse_img + mse_k


if __name__ == "__main__":
    key = jax.random.PRNGKey(0)
    k1, k2, k3, k4 = jax.random.split(key, 4)

    # Small NCHW-style shapes: batch=2, channels=4, spatial=16x16.
    img = jax.random.normal(k1, (2, 4, 16, 16), dtype=jnp.float32)
    img_gt = jax.random.normal(k2, (2, 4, 16, 16), dtype=jnp.float32)
    k = jax.random.normal(k3, (2, 4, 16, 16), dtype=jnp.float32)
    k_gt = jax.random.normal(k4, (2, 4, 16, 16), dtype=jnp.float32)

    lambda_l = 0.5  # module default is 0; nonzero exercises both terms

    loss_fn = jax.jit(functools.partial(dual_domain_loss, lambda_l=lambda_l))
    loss = jax.block_until_ready(loss_fn(img, img_gt, k, k_gt))

    # Sanity check against a pure-JAX reference.
    ref = lambda_l * jnp.mean((img - img_gt) ** 2) + jnp.mean((k - k_gt) ** 2)
    assert jnp.allclose(loss, ref, rtol=1e-5, atol=1e-5), (loss, ref)

    print("KERNEL_OK")
</pallas_src>

<mosaic_0001>
module attributes {stable_mosaic.version = 11 : i64} {
  func.func @kernel(%arg0: i32, %arg1: memref<16x128xf32, #tpu.memory_space<vmem>>, %arg2: memref<16x128xf32, #tpu.memory_space<vmem>>, %arg3: memref<16x128xf32, #tpu.memory_space<vmem>>, %arg4: memref<16x128xf32, #tpu.memory_space<vmem>>, %arg5: memref<2x1x128xf32, #tpu.memory_space<vmem>>) attributes {dimension_semantics = [#tpu.dimension_semantics<arbitrary>], iteration_bounds = array<i64: 1>, scalar_prefetch = 0 : i64, scratch_operands = 0 : i64, tpu.core_type = #tpu.core_type<tc>, window_params = [{transform_indices = @transform_0, window_bounds = array<i64: 16, 128>}, {transform_indices = @transform_1, window_bounds = array<i64: 16, 128>}, {transform_indices = @transform_2, window_bounds = array<i64: 16, 128>}, {transform_indices = @transform_3, window_bounds = array<i64: 16, 128>}, {pipeline_mode = #tpu.pipeline_mode<synchronous>, transform_indices = @transform_4, window_bounds = array<i64: 2, 1, 128>}]} {
    %c0_i32 = arith.constant 0 : i32
    %0 = arith.cmpi eq, %arg0, %c0_i32 : i32
    %1 = arith.extui %0 : i1 to i32
    %c0_i32_0 = arith.constant 0 : i32
    %2 = arith.cmpi ne, %1, %c0_i32_0 : i32
    scf.if %2 {
      %cst_20 = arith.constant 0.000000e+00 : f32
      %27 = vector.broadcast %cst_20 : f32 to vector<2x1x128xf32>
      %c0_21 = arith.constant 0 : index
      %c0_22 = arith.constant 0 : index
      %c0_23 = arith.constant 0 : index
      %28 = vector.load %arg5[%c0_21, %c0_22, %c0_23] : memref<2x1x128xf32, #tpu.memory_space<vmem>>, vector<2x1x128xf32>
      tpu.vector_store %arg5[%c0_21, %c0_22, %c0_23], %27 {strides = array<i32>} : memref<2x1x128xf32, #tpu.memory_space<vmem>>, vector<2x1x128xf32>,
    } else {
    }
    %c0 = arith.constant 0 : index
    %c0_1 = arith.constant 0 : index
    %3 = vector.load %arg1[%c0, %c0_1] : memref<16x128xf32, #tpu.memory_space<vmem>>, vector<16x128xf32>
    %c0_2 = arith.constant 0 : index
    %c0_3 = arith.constant 0 : index
    %4 = vector.load %arg2[%c0_2, %c0_3] : memref<16x128xf32, #tpu.memory_space<vmem>>, vector<16x128xf32>
    %5 = arith.subf %3, %4 : vector<16x128xf32>
    %6 = arith.mulf %5, %5 : vector<16x128xf32>
    %c0_4 = arith.constant 0 : index
    %c0_5 = arith.constant 0 : index
    %c0_6 = arith.constant 0 : index
    %7 = vector.load %arg5[%c0_4, %c0_5, %c0_6] : memref<2x1x128xf32, #tpu.memory_space<vmem>>, vector<1x1x128xf32>
    %8 = vector.shape_cast %7 : vector<1x1x128xf32> to vector<1x128xf32>
    %cst = arith.constant dense<0.000000e+00> : vector<128xf32>
    %9 = vector.multi_reduction <add>, %6, %cst [0] : vector<16x128xf32> to vector<128xf32>
    %10 = vector.shape_cast %9 : vector<128xf32> to vector<1x128xf32>
    %11 = arith.addf %8, %10 : vector<1x128xf32>
    %c0_7 = arith.constant 0 : index
    %c0_8 = arith.constant 0 : index
    %c0_9 = arith.constant 0 : index
    %12 = vector.load %arg5[%c0_7, %c0_8, %c0_9] : memref<2x1x128xf32, #tpu.memory_space<vmem>>, vector<1x1x128xf32>
    %13 = vector.shape_cast %12 : vector<1x1x128xf32> to vector<1x128xf32>
    %14 = vector.shape_cast %11 : vector<1x128xf32> to vector<1x1x128xf32>
    tpu.vector_store %arg5[%c0_7, %c0_8, %c0_9], %14 {strides = array<i32>} : memref<2x1x128xf32, #tpu.memory_space<vmem>>, vector<1x1x128xf32>,
    %c0_10 = arith.constant 0 : index
    %c0_11 = arith.constant 0 : index
    %15 = vector.load %arg3[%c0_10, %c0_11] : memref<16x128xf32, #tpu.memory_space<vmem>>, vector<16x128xf32>
    %c0_12 = arith.constant 0 : index
    %c0_13 = arith.constant 0 : index
    %16 = vector.load %arg4[%c0_12, %c0_13] : memref<16x128xf32, #tpu.memory_space<vmem>>, vector<16x128xf32>
    %17 = arith.subf %15, %16 : vector<16x128xf32>
    %18 = arith.mulf %17, %17 : vector<16x128xf32>
    %c1 = arith.constant 1 : index
    %c0_14 = arith.constant 0 : index
    %c0_15 = arith.constant 0 : index
    %19 = vector.load %arg5[%c1, %c0_14, %c0_15] : memref<2x1x128xf32, #tpu.memory_space<vmem>>, vector<1x1x128xf32>
    %20 = vector.shape_cast %19 : vector<1x1x128xf32> to vector<1x128xf32>
    %cst_16 = arith.constant dense<0.000000e+00> : vector<128xf32>
    %21 = vector.multi_reduction <add>, %18, %cst_16 [0] : vector<16x128xf32> to vector<128xf32>
    %22 = vector.shape_cast %21 : vector<128xf32> to vector<1x128xf32>
    %23 = arith.addf %20, %22 : vector<1x128xf32>
    %c1_17 = arith.constant 1 : index
    %c0_18 = arith.constant 0 : index
    %c0_19 = arith.constant 0 : index
    %24 = vector.load %arg5[%c1_17, %c0_18, %c0_19] : memref<2x1x128xf32, #tpu.memory_space<vmem>>, vector<1x1x128xf32>
    %25 = vector.shape_cast %24 : vector<1x1x128xf32> to vector<1x128xf32>
    %26 = vector.shape_cast %23 : vector<1x128xf32> to vector<1x1x128xf32>
    tpu.vector_store %arg5[%c1_17, %c0_18, %c0_19], %26 {strides = array<i32>} : memref<2x1x128xf32, #tpu.memory_space<vmem>>, vector<1x1x128xf32>,
    return
  }
  func.func @transform_0(%arg0: i32) -> (i32, i32) {
    %c0_i32 = arith.constant 0 : i32
    %c0_i32_0 = arith.constant 0 : i32
    return %arg0, %c0_i32 : i32, i32
  }
  func.func @transform_1(%arg0: i32) -> (i32, i32) {
    %c0_i32 = arith.constant 0 : i32
    %c0_i32_0 = arith.constant 0 : i32
    return %arg0, %c0_i32 : i32, i32
  }
  func.func @transform_2(%arg0: i32) -> (i32, i32) {
    %c0_i32 = arith.constant 0 : i32
    %c0_i32_0 = arith.constant 0 : i32
    return %arg0, %c0_i32 : i32, i32
  }
  func.func @transform_3(%arg0: i32) -> (i32, i32) {
    %c0_i32 = arith.constant 0 : i32
    %c0_i32_0 = arith.constant 0 : i32
    return %arg0, %c0_i32 : i32, i32
  }
  func.func @transform_4(%arg0: i32) -> (i32, i32, i32) {
    %c0_i32 = arith.constant 0 : i32
    %c0_i32_0 = arith.constant 0 : i32
    %c0_i32_1 = arith.constant 0 : i32
    %c0_i32_2 = arith.constant 0 : i32
    return %c0_i32, %c0_i32_0, %c0_i32_1 : i32, i32, i32
  }
}

</mosaic_0001>

<bundles_post_ra>
// kernel: dual_domain_loss.1
= control target key start
LH: loop header
LB: loop body
LE: loop exit
PB: predicated region body
PF: predicated region fallthrough
CT: control target
= control target key end

     0   :  { %v67_v0 = vmov 0.0   ;;  %s135_s4 = inlined_call_operand.vmem [shape: f32[2,1,128], index: 4, kind: output, shape index: {}]   ;;  %s136_s0 = inlined_call_operand.vmem [shape: f32[16,128], index: 0, kind: input, shape index: {}]   ;;  %s137_s1 = inlined_call_operand.vmem [shape: f32[16,128], index: 1, kind: input, shape index: {}]   ;;  %s138_s2 = inlined_call_operand.vmem [shape: f32[16,128], index: 2, kind: input, shape index: {}]   ;;  %s139_s3 = inlined_call_operand.vmem [shape: f32[16,128], index: 3, kind: input, shape index: {}]  }
   0x1   :  { %21 = vst [vmem:[%s135_s4] sm:$0x1] %v67_v0  ;;  %22 = vst [vmem:[%s135_s4 + $0x1] sm:$0x1] %v67_v0  ;;  %v23_v1 = vld [vmem:[%s136_s0] sm:$0xff]  ;;  %v24_v2 = vld [vmem:[%s136_s0 + $0x8] sm:$0xff] }
   0x2   :  { %v25_v3 = vld [vmem:[%s137_s1] sm:$0xff]  ;;  %v26_v4 = vld [vmem:[%s137_s1 + $0x8] sm:$0xff] }
   0x3   :  { %v27_v5 = vsub.f32 %v23_v1, %v25_v3  ;;  %v41_v6 = vld [vmem:[%s138_s2] sm:$0xff]  ;;  %v42_v7 = vld [vmem:[%s138_s2 + $0x8] sm:$0xff]  ;;  %v28_v8 = vsub.f32 %v24_v2, %v26_v4 }
   0x4   :  { %v43_v9 = vld [vmem:[%s139_s3] sm:$0xff]  ;;  %v44_v10 = vld [vmem:[%s139_s3 + $0x8] sm:$0xff] }
   0x5   :  { %v29_v11 = vmul.f32 %v27_v5, %v27_v5  ;;  %v45_v12 = vsub.f32 %v41_v6, %v43_v9  ;;  %v46_v13 = vsub.f32 %v42_v7, %v44_v10  ;;  %v30_v14 = vmul.f32 %v28_v8, %v28_v8 }
   0x7   :  { %v47_v15 = vmul.f32 %v45_v12, %v45_v12  ;;  %v48_v16 = vmul.f32 %v46_v13, %v46_v13  ;;  %v32_v17 = vadd.f32 %v30_v14, %v29_v11 }
   0x8   :  { %v31_v28 = vld [vmem:[%s135_s4] sm:$0x1]  ;;  %v64_v31 = vld [vmem:[%s135_s4 + $0x1] sm:$0x1] }
   0x9   :  { %v51_v18 = vadd.f32 %v48_v16, %v47_v15  ;;  %v33_v19 = vrot.slane %v32_v17, 4 }
   0xb   :  { %v52_v20 = vrot.slane %v51_v18, 4  ;;  %v34_v21 = vadd.f32 %v33_v19, %v32_v17 }
   0xd   :  { %v53_v22 = vadd.f32 %v52_v20, %v51_v18  ;;  %v35_v23 = vrot.slane %v34_v21, 2 }
   0xf   :  { %v54_v24 = vrot.slane %v53_v22, 2  ;;  %v36_v25 = vadd.f32 %v35_v23, %v34_v21 }
  0x11   :  { %v55_v26 = vadd.f32 %v54_v24, %v53_v22  ;;  %v37_v27 = vrot.slane %v36_v25, 1 }
  0x13   :  { %v56_v29 = vrot.slane %v55_v26, 1  ;;  %v38_v30 = vadd.f32 %v37_v27, %v36_v25 }
  0x15   :  { %v57_v32 = vadd.f32 %v56_v29, %v55_v26  ;;  %v39_v33 = vadd.f32 %v38_v30, %v31_v28 }
  0x17   :  { %v58_v34 = vadd.f32 %v64_v31, %v57_v32  ;;  %40 = vst [vmem:[%s135_s4] sm:$0x1] %v39_v33 }
  0x19   :  { %65 = vst [vmem:[%s135_s4 + $0x1] sm:$0x1] %v58_v34 }

</bundles_post_ra>
